<compile_context>
chip_gen: v6e
topology: v6e:2x2x1
jax: 0.10.0
libtpu: 0.0.40
codegen_flags: <defaults>
</compile_context>

<pallas_src>
import math
import functools

import jax
import jax.numpy as jnp
from jax.experimental import pallas as pl
from jax.experimental.pallas import tpu as pltpu

# ---------------- small config, consistent with the module (hop = n_fft // 4) ----------------
N_FFT = 128
WIN_LEN = 128
HOP = 32
SIG_LEN = 224                     # -> n_frames = 1 + SIG_LEN // HOP = 8  (sublane aligned)
BATCH = 4

N_FRAMES = 1 + SIG_LEN // HOP     # torch.stft frame count with center=True
assert N_FFT % HOP == 0 and (SIG_LEN + N_FFT) % HOP == 0 and SIG_LEN % HOP == 0


# ------------------------------- offline constants -------------------------------
def hamming_window(n):
    # torch.hamming_window(n) default periodic=True: 0.54 - 0.46*cos(2*pi*i/n)
    i = jnp.arange(n, dtype=jnp.float32)
    return 0.54 - 0.46 * jnp.cos(2.0 * math.pi * i / n)


def fused_dft_matrix(n_fft, win_length, dtype=jnp.bfloat16):
    """[n_fft, 2*n_fft] = diag(window) @ [cos | sin] * n_fft**-0.5, cast to MXU dtype.

    Window and torch.stft(normalized=True) scaling are folded in so the kernel body is a
    single matmul + magnitude. The sign of the imaginary part is irrelevant for |X|.
    """
    k = jnp.arange(n_fft, dtype=jnp.float32)
    ang = 2.0 * math.pi * jnp.outer(k, k) / n_fft
    cs = jnp.concatenate([jnp.cos(ang), jnp.sin(ang)], axis=1)   # [n_fft, 2*n_fft]
    win = hamming_window(win_length)                             # win_length == n_fft here
    norm = 1.0 / math.sqrt(n_fft)
    return ((win[:, None] * cs) * norm).astype(dtype)


# ------------------------------- Pallas kernel -------------------------------
def _stft_mag_kernel(fr_ref, wdft_ref, o_ref, *, n_fft):
    # One bf16 MXU matmul against the fused (window * [cos|sin] * norm) matrix with f32
    # accumulation, then split re/im at the lane-128 boundary and take the magnitude in f32.
    y = jnp.dot(fr_ref[...], wdft_ref[...], preferred_element_type=jnp.float32)
    re = y[:, :n_fft]
    im = y[:, n_fft:]
    o_ref[...] = jnp.sqrt(re * re + im * im).astype(o_ref.dtype)


def _pick_rows_per_block(m, max_rows=512):
    """Biggest multiple of 8 that divides m and is <= max_rows (MXU-fill vs. VMEM knob)."""
    best = 8
    r = 8
    while r <= min(m, max_rows):
        if m % r == 0:
            best = r
        r += 8
    return best


def stft_magnitude(frames_flat, w_dft, rows_per_block=None, out_dtype=jnp.float32):
    """frames_flat: [M, n_fft] framed signal -> [M, n_fft] magnitude spectrogram rows."""
    M, N = frames_flat.shape
    K2 = w_dft.shape[1]
    if rows_per_block is None:
        rows_per_block = _pick_rows_per_block(M)
    assert M % rows_per_block == 0 and rows_per_block % 8 == 0 and N % 128 == 0

    flops = 2 * M * N * K2
    bytes_accessed = (M * N * frames_flat.dtype.itemsize
                      + N * K2 * w_dft.dtype.itemsize
                      + M * N * jnp.dtype(out_dtype).itemsize)

    return pl.pallas_call(
        functools.partial(_stft_mag_kernel, n_fft=N),
        out_shape=jax.ShapeDtypeStruct((M, N), out_dtype),
        grid=(M // rows_per_block,),
        in_specs=[
            pl.BlockSpec((rows_per_block, N), lambda i: (i, 0)),
            # RHS block index is constant across the grid -> held resident by the pipeline.
            pl.BlockSpec((N, K2), lambda i: (0, 0)),
        ],
        out_specs=pl.BlockSpec((rows_per_block, N), lambda i: (i, 0)),
        compiler_params=pltpu.CompilerParams(
            dimension_semantics=("parallel",)),   # lets v7x split row blocks across its 2 TCs
        cost_estimate=pl.CostEstimate(
            flops=flops, transcendentals=0, bytes_accessed=bytes_accessed),
    )(frames_flat, w_dft)


# ------------------------------- module forward -------------------------------
def frame_signal(x):
    """center=True reflect padding + overlapping framing, gather-free (static slices).

    hop divides n_fft, so each frame is n_fft//hop consecutive hop-sized chunks; the
    [B, n_frames, n_fft] framed array is built from shifted strided views + one concat
    instead of an XLA gather.
    """
    B, _ = x.shape
    pad = N_FFT // 2
    xp = jnp.pad(x, ((0, 0), (pad, pad)), mode="reflect")          # [B, L + n_fft]
    n_chunks = xp.shape[1] // HOP
    chunks = xp.reshape(B, n_chunks, HOP)                          # [B, n_chunks, hop]
    cols = [chunks[:, j:j + N_FRAMES, :] for j in range(N_FFT // HOP)]
    return jnp.concatenate(cols, axis=-1)                          # [B, n_frames, n_fft]
    # TODO(synk): for long signals, pass the reflect-padded signal into the kernel and
    # assemble the [rows, n_fft] LHS in-kernel with pl.ds reads to avoid materializing
    # the 4x-inflated framed array in HBM entirely.


def stft_embedding(x, w_dft):
    """STFTEmbedding.forward: x [B, L] -> [B, n_frames, n_fft] magnitude spectrogram."""
    B = x.shape[0]
    frames = frame_signal(x).reshape(B * N_FRAMES, N_FFT)
    frames = frames.astype(w_dft.dtype)                            # bf16 LHS for the MXU
    mag = stft_magnitude(frames, w_dft, out_dtype=x.dtype)
    return mag.reshape(B, N_FRAMES, N_FFT)   # already (time, freq) == torch .transpose(1, 2)


# ------------------------------- pure-JAX reference -------------------------------
def stft_embedding_ref(x):
    frames = frame_signal(x)                                       # [B, F, n_fft], f32
    fw = frames * hamming_window(WIN_LEN)[None, None, :]
    k = jnp.arange(N_FFT, dtype=jnp.float32)
    ang = 2.0 * math.pi * jnp.outer(k, k) / N_FFT
    re = jnp.einsum("bfn,nk->bfk", fw, jnp.cos(ang), precision="highest")
    im = -jnp.einsum("bfn,nk->bfk", fw, jnp.sin(ang), precision="highest")
    return jnp.sqrt(re * re + im * im) / math.sqrt(N_FFT)


# ------------------------------- main -------------------------------
if __name__ == "__main__":
    key = jax.random.PRNGKey(0)
    x = jax.random.normal(key, (BATCH, SIG_LEN), dtype=jnp.float32)

    w_dft = fused_dft_matrix(N_FFT, WIN_LEN)                       # [128, 256] fused bf16 weights

    fwd = jax.jit(stft_embedding)
    out = fwd(x, w_dft)
    jax.block_until_ready(out)

    assert out.shape == (BATCH, N_FRAMES, N_FFT)
    assert bool(jnp.all(jnp.isfinite(out)))

    ref = stft_embedding_ref(x)
    max_err = float(jnp.max(jnp.abs(out - ref)))
    # bf16 matmul operands with f32 accumulation over a 128-deep reduction.
    assert bool(jnp.allclose(out, ref, rtol=2e-2, atol=2e-2)), f"max_abs_err={max_err}"

    print("KERNEL_OK")
</pallas_src>

<mosaic_0001>
module attributes {stable_mosaic.version = 11 : i64} {
  func.func @_stft_mag_kernel(%arg0: i32, %arg1: memref<32x128xbf16, #tpu.memory_space<vmem>>, %arg2: memref<128x256xbf16, #tpu.memory_space<vmem>>, %arg3: memref<32x128xf32, #tpu.memory_space<vmem>>) attributes {dimension_semantics = [#tpu.dimension_semantics<parallel>], iteration_bounds = array<i64: 1>, scalar_prefetch = 0 : i64, scratch_operands = 0 : i64, tpu.core_type = #tpu.core_type<tc>, window_params = [{transform_indices = @transform_0, window_bounds = array<i64: 32, 128>}, {pipeline_mode = #tpu.pipeline_mode<synchronous>, transform_indices = @transform_1, window_bounds = array<i64: 128, 256>}, {transform_indices = @transform_2, window_bounds = array<i64: 32, 128>}]} {
    %c0 = arith.constant 0 : index
    %c0_0 = arith.constant 0 : index
    %0 = vector.load %arg1[%c0, %c0_0] : memref<32x128xbf16, #tpu.memory_space<vmem>>, vector<32x128xbf16>
    %c0_1 = arith.constant 0 : index
    %c0_2 = arith.constant 0 : index
    %1 = vector.load %arg2[%c0_1, %c0_2] : memref<128x256xbf16, #tpu.memory_space<vmem>>, vector<128x256xbf16>
    %cst = arith.constant dense<0.000000e+00> : vector<32x256xf32>
    %2 = tpu.matmul %0, %1, %cst {dimension_numbers = #tpu.dot_dimension_numbers<[1], [0], [0], [1], [0, 0, 1, 1], [], []>} : vector<32x128xbf16>, vector<128x256xbf16>, vector<32x256xf32> -> vector<32x256xf32>
    %3 = vector.extract_strided_slice %2 {offsets = [0, 0], sizes = [32, 128], strides = [1, 1]} : vector<32x256xf32> to vector<32x128xf32>
    %4 = vector.extract_strided_slice %2 {offsets = [0, 128], sizes = [32, 128], strides = [1, 1]} : vector<32x256xf32> to vector<32x128xf32>
    %5 = arith.mulf %3, %3 : vector<32x128xf32>
    %6 = arith.mulf %4, %4 : vector<32x128xf32>
    %7 = arith.addf %5, %6 : vector<32x128xf32>
    %8 = math.sqrt %7 : vector<32x128xf32>
    %c0_3 = arith.constant 0 : index
    %c0_4 = arith.constant 0 : index
    %9 = vector.load %arg3[%c0_3, %c0_4] : memref<32x128xf32, #tpu.memory_space<vmem>>, vector<32x128xf32>
    tpu.vector_store %arg3[%c0_3, %c0_4], %8 {strides = array<i32>} : memref<32x128xf32, #tpu.memory_space<vmem>>, vector<32x128xf32>,
    return
  }
  func.func @transform_0(%arg0: i32) -> (i32, i32) {
    %c0_i32 = arith.constant 0 : i32
    %c0_i32_0 = arith.constant 0 : i32
    return %arg0, %c0_i32 : i32, i32
  }
  func.func @transform_1(%arg0: i32) -> (i32, i32) {
    %c0_i32 = arith.constant 0 : i32
    %c0_i32_0 = arith.constant 0 : i32
    %c0_i32_1 = arith.constant 0 : i32
    return %c0_i32, %c0_i32_0 : i32, i32
  }
  func.func @transform_2(%arg0: i32) -> (i32, i32) {
    %c0_i32 = arith.constant 0 : i32
    %c0_i32_0 = arith.constant 0 : i32
    return %arg0, %c0_i32 : i32, i32
  }
}

</mosaic_0001>

<bundles_post_ra>
// kernel: stft_embedding.1
= control target key start
LH: loop header
LB: loop body
LE: loop exit
PB: predicated region body
PF: predicated region fallthrough
CT: control target
= control target key end

     0   :  { %v332_v2 = vmov 0   ;;  %s408_s0 = inlined_call_operand.vmem [shape: bf16[32,128], index: 0, kind: input, shape index: {}]   ;;  %s409_s1 = inlined_call_operand.vmem [shape: bf16[128,256], index: 1, kind: input, shape index: {}]   ;;  %s410_s2 = inlined_call_operand.hbm [shape: f32[32,128], index: 2, kind: output, shape index: {}]  }
   0x1   :  { %v276_v0 = vld [vmem:[%s409_s1 + $0x74] ss:$8 sps:$4 sm:$0xff]   ;;  %v278_v1 = vld [vmem:[%s409_s1 + $0x70] ss:$8 sps:$4 sm:$0xff]   ;;  %157 = vmatprep.mubr.bf16.mxu0 %v332_v2  ;;  %167 = vmatprep.mubr.bf16.mxu1 %v332_v2  ;;  %v279_v3 = vld [vmem:[%s409_s1 + $0x64] ss:$8 sps:$4 sm:$0xff]  }
   0x2   :  { %125 = vmatprep.subr.bf16.mxu0 %v276_v0  ;;  %256 = vmatprep.subr.bf16.mxu1 %v276_v0  ;;  %v281_v4 = vld [vmem:[%s409_s1 + $0x60] ss:$8 sps:$4 sm:$0xff]   ;;  %v282_v5 = vld [vmem:[%s409_s1 + $0x54] ss:$8 sps:$4 sm:$0xff]   ;;  %v284_v6 = vld [vmem:[%s409_s1 + $0x50] ss:$8 sps:$4 sm:$0xff]  }
   0x3   :  { %126 = vmatpush1.bf16.msra.mxu0 %v278_v1  ;;  %264 = vmatpush1.bf16.msra.mxu1 %v278_v1  ;;  %v285_v7 = vld [vmem:[%s409_s1 + $0x44] ss:$8 sps:$4 sm:$0xff]   ;;  %v287_v8 = vld [vmem:[%s409_s1 + $0x40] ss:$8 sps:$4 sm:$0xff]   ;;  %v288_v9 = vld [vmem:[%s409_s1 + $0x34] ss:$8 sps:$4 sm:$0xff]  }
   0x4   :  { %127 = vmatprep.subr.bf16.mxu0 %v279_v3  ;;  %257 = vmatprep.subr.bf16.mxu1 %v279_v3 }
   0x7   :  { %128 = vmatpush1.bf16.msra.mxu0 %v281_v4  ;;  %265 = vmatpush1.bf16.msra.mxu1 %v281_v4 }
   0x8   :  { %129 = vmatprep.subr.bf16.mxu0 %v282_v5  ;;  %258 = vmatprep.subr.bf16.mxu1 %v282_v5 }
   0xb   :  { %130 = vmatpush1.bf16.msra.mxu0 %v284_v6  ;;  %266 = vmatpush1.bf16.msra.mxu1 %v284_v6 }
   0xc   :  { %131 = vmatprep.subr.bf16.mxu0 %v285_v7  ;;  %259 = vmatprep.subr.bf16.mxu1 %v285_v7 }
   0xd   :  { %7 = vsyncpa [#allocation3], 0  ;;  %v290_v10 = vld [vmem:[%s409_s1 + $0x30] ss:$8 sps:$4 sm:$0xff]   ;;  %v291_v11 = vld [vmem:[%s409_s1 + $0x24] ss:$8 sps:$4 sm:$0xff]  }
   0xe   :  { %v293_v12 = vld [vmem:[%s409_s1 + $0x20] ss:$8 sps:$4 sm:$0xff]   ;;  %v294_v13 = vld [vmem:[%s409_s1 + $0x14] ss:$8 sps:$4 sm:$0xff]   ;;  %v296_v14 = vld [vmem:[%s409_s1 + $0x10] ss:$8 sps:$4 sm:$0xff]  }
   0xf   :  { %132 = vmatpush1.bf16.msra.mxu0 %v287_v8  ;;  %267 = vmatpush1.bf16.msra.mxu1 %v287_v8  ;;  %v297_v15 = vld [vmem:[%s409_s1 + $0x4] ss:$8 sps:$4 sm:$0xff]   ;;  %v299_v16 = vld [vmem:[%s409_s1] ss:$8 sps:$4 sm:$0xff]  }
  0x10   :  { %133 = vmatprep.subr.bf16.mxu0 %v288_v9  ;;  %260 = vmatprep.subr.bf16.mxu1 %v288_v9  ;;  %v300_v17 = vld [vmem:[%s408_s0] sm:$0xff]   ;;  %v301_v18 = vld [vmem:[%s408_s0 + $0x8] sm:$0xff]   ;;  %s333_s0 = smov [#allocation2]  }
  0x11   :  { %s227_s1 = sshll.u32 %s333_s0, 4  ;;  %s228_s1 = int_to_ptr.vmem [resolvable:$true] %s227_s1 }
  0x12   :  { %s310_s17 = scalar_lea.vmem %s228_s1, 512  ;;  %p315_p1 = scmp.lt.s32.totalorder %s228_s1, %s228_s1 }
  0x13   :  { %134 = vmatpush1.bf16.msra.mxu0 %v290_v10  ;;  %268 = vmatpush1.bf16.msra.mxu1 %v290_v10  ;;  %p311_p0 = scmp.ne.s32.totalorder %s228_s1, %s310_s17  ;;  %p316_p2 = scmp.lt.s32.totalorder %s310_s17, %s310_s17 }
  0x14   :  { %135 = vmatprep.subr.bf16.mxu0 %v291_v11  ;;  %261 = vmatprep.subr.bf16.mxu1 %v291_v11 }
  0x15   :  { %p317_p3 = por %p316_p2, %p315_p1 }
  0x17   :  { %136 = vmatpush1.bf16.msra.mxu0 %v293_v12  ;;  %269 = vmatpush1.bf16.msra.mxu1 %v293_v12  ;;  %p318_p4 = pnand %p317_p3, %p311_p0 }
  0x18   :  { %137 = vmatprep.subr.bf16.mxu0 %v294_v13  ;;  %262 = vmatprep.subr.bf16.mxu1 %v294_v13 }
  0x1b   :  { %138 = vmatpush1.bf16.msra.mxu0 %v296_v14  ;;  %270 = vmatpush1.bf16.msra.mxu1 %v296_v14 }
  0x1c   :  { %139 = vmatprep.subr.bf16.mxu0 %v297_v15  ;;  %263 = vmatprep.subr.bf16.mxu1 %v297_v15 }
  0x1f   :  { %140 = vmatpush1.bf16.msra.mxu0 %v299_v16  ;;  %271 = vmatpush1.bf16.msra.mxu1 %v299_v16 }
  0x22   :  { %158 = vmatmul.mubr.bf16.vlgmr.msra.gmra.mxu0 %v300_v17  ;;  %168 = vmatmul.mubr.bf16.vlgmr.msra.gmra.mxu1 %v301_v18 }
  0xe2   :  { %v159_v19 = vpop.f32.mrf.mxu0  ;;  %v169_v20 = vpop.f32.mrf.mxu1 }
  0xe3   :  { %v178_v23 = vmul.f32 %v159_v19, %v159_v19  ;;  %v180_v24 = vmul.f32 %v169_v20, %v169_v20 }
  0xe4   :  { %v161_v21 = vpop.f32.mrf.mxu0  ;;  %v171_v22 = vpop.f32.mrf.mxu1 }
  0xe5   :  { %v182_v25 = vmul.f32 %v161_v21, %v161_v21  ;;  %v184_v26 = vmul.f32 %v171_v22, %v171_v22 }
  0xe6   :  { %v163_v27 = vpop.f32.mrf.mxu0  ;;  %v173_v28 = vpop.f32.mrf.mxu1 }
  0xe7   :  { %v186_v29 = vadd.f32 %v182_v25, %v178_v23  ;;  %v188_v30 = vadd.f32 %v184_v26, %v180_v24  ;;  %v179_v31 = vmul.f32 %v163_v27, %v163_v27  ;;  %v181_v34 = vmul.f32 %v173_v28, %v173_v28 }
  0xe8   :  { %v165_v32 = vpop.f32.mrf.mxu0  ;;  %v175_v33 = vpop.f32.mrf.mxu1 }
  0xe9   :  { %302 = vrsqrt.f32 %v186_v29  ;;  %v183_v35 = vmul.f32 %v165_v32, %v165_v32  ;;  %v185_v36 = vmul.f32 %v175_v33, %v175_v33  ;;  %vm192_vm0 = vcmp.eq.f32.partialorder %v186_v29, inf }
  0xea   :  { %304 = vrsqrt.f32 %v188_v30  ;;  %v195_v43 = vand.u32 2147483648, %v186_v29  ;;  %vm194_vm1 = vcmp.eq.f32.partialorder %v186_v29, 0.0  ;;  %vm206_vm2 = vcmp.eq.f32.partialorder %v188_v30, inf }
  0xeb   :  { %v187_v37 = vadd.f32 %v183_v35, %v179_v31  ;;  %v189_v38 = vadd.f32 %v185_v36, %v181_v34  ;;  %v209_v45 = vand.u32 2147483648, %v188_v30  ;;  %vm208_vm3 = vcmp.eq.f32.partialorder %v188_v30, 0.0 }
  0xed   :  { %306 = vrsqrt.f32 %v187_v37  ;;  %vm199_vm4 = vcmp.eq.f32.partialorder %v187_v37, inf  ;;  %v202_v52 = vand.u32 2147483648, %v187_v37  ;;  %vm213_vm5 = vcmp.eq.f32.partialorder %v189_v38, inf }
  0xee   :  { %308 = vrsqrt.f32 %v189_v38  ;;  %v216_v54 = vand.u32 2147483648, %v189_v38  ;;  %vm201_vm6 = vcmp.eq.f32.partialorder %v187_v37, 0.0  ;;  %vm215_vm7 = vcmp.eq.f32.partialorder %v189_v38, 0.0 }
  0xf6   :  { %v303_v39 = vpop.eup %302 }
  0xf7   :  { %v305_v40 = vpop.eup %304  ;;  %v191_v41 = vmul.f32 %v303_v39, %v186_v29 }
  0xf8   :  { %v205_v42 = vmul.f32 %v305_v40, %v188_v30 }
  0xf9   :  { %v193_v44 = vsel %vm192_vm0, %v186_v29, %v191_v41 }
  0xfa   :  { %v307_v46 = vpop.eup %306  ;;  %v196_v47 = vsel %vm194_vm1, %v195_v43, %v193_v44  ;;  %v207_v48 = vsel %vm206_vm2, %v188_v30, %v205_v42 }
  0xfb   :  { %v309_v49 = vpop.eup %308  ;;  %v198_v50 = vmul.f32 %v307_v46, %v187_v37  ;;  %v210_v51 = vsel %vm208_vm3, %v209_v45, %v207_v48  ;;  %218 = vst [vmem:[#allocation2] sm:$0xff] %v196_v47 }
  0xfc   :  { %v212_v53 = vmul.f32 %v309_v49, %v189_v38  ;;  %220 = vst [vmem:[#allocation2 + $0x10] sm:$0xff] %v210_v51 }
  0xfd   :  { %v200_v55 = vsel %vm199_vm4, %v187_v37, %v198_v50 }
  0xfe   :  { %v203_v56 = vsel %vm201_vm6, %v202_v52, %v200_v55  ;;  %v214_v57 = vsel %vm213_vm5, %v189_v38, %v212_v53 }
  0xff   :  { %v217_v58 = vsel %vm215_vm7, %v216_v54, %v214_v57  ;;  %219 = vst [vmem:[#allocation2 + $0x8] sm:$0xff] %v203_v56 }
 0x100   :  { %221 = vst [vmem:[#allocation2 + $0x18] sm:$0xff] %v217_v58 }
 0x101   :  { %321 = shalt.err (!%p318_p4)
}
 0x102   :  { %s334_s18 = smov 128   ;;  %s335_s19 = smov 8  }
 0x103   :  { %233 = dma.vmem_to_hbm [thread:$0]  %s228_s1, 512, %s410_s2, [#allocation3], %s334_s18, %s334_s18, %s335_s19  }
 0x104   :  { %330 = dma.done.wait [#allocation3], 512  }
 0x105   :  { %331 = vsyncadd [#allocation3], 4294966784 }
 0x106   :  { %237 = vsyncpa [#allocation3], 1 }

</bundles_post_ra>
